<compile_context>
chip_gen: v7x
topology: tpu7x:2x2x1
jax: 0.10.0
libtpu: 0.0.40
codegen_flags: <defaults>
</compile_context>

<pallas_src>
import functools

import jax
import jax.numpy as jnp
from jax import lax
from jax.experimental import pallas as pl
from jax.experimental.pallas import tpu as pltpu

LANES = 128
SUBLANES = 8


def _round_up(x, m):
    return ((x + m - 1) // m) * m


def _msle_kernel(p_ref, t_ref, o_ref, *, total_rows, block_rows, mask_rows):
    c = pl.program_id(0)                 # chunk axis ("parallel", megacore on v7x)
    i = pl.program_id(1)                 # reduction axis ("arbitrary")
    blocks_per_chunk = pl.num_programs(1)

    # Output block (8, 128) stays resident in VMEM across the reduction axis:
    # it acts as the per-chunk vector accumulator.
    @pl.when(i == 0)
    def _():
        o_ref[...] = jnp.zeros_like(o_ref)

    p = p_ref[...].astype(jnp.float32)
    t = t_ref[...].astype(jnp.float32)
    d = jnp.log1p(p) - jnp.log1p(t)
    d2 = d * d

    if mask_rows:
        # Mask rows past the true row count (ragged last block / OOB rows).
        row0 = (c * blocks_per_chunk + i) * block_rows
        row_ids = row0 + lax.broadcasted_iota(jnp.int32, d2.shape, 0)
        d2 = jnp.where(row_ids < total_rows, d2, jnp.float32(0.0))

    # Fold the (block_rows, 128) tile onto the (8, 128) accumulator with pure
    # VPU adds (no per-step cross-lane reduction, no SMEM scalar RMW).
    o_ref[...] += d2.reshape(block_rows // SUBLANES, SUBLANES, LANES).sum(axis=0)


def _msle_partials(p2d, t2d, *, block_rows, total_rows, n_chunks,
                   blocks_per_chunk, mask_rows, vmem_limit_bytes):
    kernel = functools.partial(
        _msle_kernel,
        total_rows=total_rows,
        block_rows=block_rows,
        mask_rows=mask_rows,
    )
    in_spec = pl.BlockSpec(
        (block_rows, LANES), lambda c, i: (c * blocks_per_chunk + i, 0)
    )
    return pl.pallas_call(
        kernel,
        out_shape=jax.ShapeDtypeStruct((n_chunks * SUBLANES, LANES), jnp.float32),
        grid_spec=pltpu.PrefetchScalarGridSpec(
            num_scalar_prefetch=0,
            grid=(n_chunks, blocks_per_chunk),
            in_specs=[in_spec, in_spec],
            out_specs=pl.BlockSpec((SUBLANES, LANES), lambda c, i: (c, 0)),
        ),
        compiler_params=pltpu.CompilerParams(
            dimension_semantics=("parallel", "arbitrary"),
            vmem_limit_bytes=vmem_limit_bytes,
        ),
    )(p2d, t2d)


def msle_loss(y_pred, y_true, block_rows=2048, validate=False):
    """Mean Squared Logarithmic Error, matching PyTorch MSLELoss.forward."""
    if y_pred.shape != y_true.shape:
        raise ValueError("y_pred and y_true must have the same shape.")
    if validate:
        # Optional eager non-negativity check (mirrors the PyTorch ValueError).
        # Off by default: it forces an extra full pass + host sync over both
        # inputs and is not usable under jit/vmap/grad.
        if not bool(jnp.all(y_pred >= 0)) or not bool(jnp.all(y_true >= 0)):
            raise ValueError("Input tensors for MSLE must be non-negative.")
    # TODO(synk): negative-input ValueError is only raised via validate=True on
    # concrete arrays; there is no in-kernel exception equivalent.

    n_elems = int(y_pred.size)
    if n_elems == 0:
        return jnp.float32(jnp.nan)

    # Flatten in the ORIGINAL dtype (bf16 inputs stay bf16 in HBM; the kernel
    # upcasts per-tile). Only pad when the element count isn't lane-aligned.
    p_flat = jnp.ravel(y_pred)
    t_flat = jnp.ravel(y_true)
    padded = _round_up(n_elems, LANES)
    if padded != n_elems:
        pad = padded - n_elems
        p_flat = jnp.pad(p_flat, (0, pad))   # zeros contribute 0 to the sum
        t_flat = jnp.pad(t_flat, (0, pad))
    rows = padded // LANES
    p2d = p_flat.reshape(rows, LANES)
    t2d = t_flat.reshape(rows, LANES)

    # Tile: as many rows as available, capped at `block_rows`, multiple of 8.
    br = min(int(block_rows), _round_up(rows, SUBLANES))
    br = _round_up(br, SUBLANES)

    nb = -(-rows // br)                       # total number of row tiles
    if nb >= 2 and nb % 2 == 0:
        n_chunks, blocks_per_chunk = 2, nb // 2   # split across 2 TCs on v7x
    else:
        n_chunks, blocks_per_chunk = 1, nb
    mask_rows = (nb * br != rows)             # ragged last tile needs masking

    # VMEM budget: 2 inputs x 2 pipeline buffers x tile, plus headroom; capped
    # well under v7x's 64 MiB physical VMEM per TensorCore.
    tile_bytes = br * LANES * jnp.dtype(p2d.dtype).itemsize
    vmem_limit_bytes = int(min(32 << 20, max(16 << 20, 4 * tile_bytes + (4 << 20))))

    partials = _msle_partials(
        p2d, t2d,
        block_rows=br, total_rows=rows,
        n_chunks=n_chunks, blocks_per_chunk=blocks_per_chunk,
        mask_rows=mask_rows, vmem_limit_bytes=vmem_limit_bytes,
    )
    # Single cross-lane reduction + exact mean over the true element count.
    return jnp.sum(partials) / jnp.float32(n_elems)


if __name__ == "__main__":
    key = jax.random.PRNGKey(0)
    k1, k2 = jax.random.split(key)
    shape = (2, 4, 16, 16)  # NCHW, small synthetic non-negative inputs
    y_pred = jax.random.uniform(k1, shape, dtype=jnp.float32) * 3.0
    y_true = jax.random.uniform(k2, shape, dtype=jnp.float32) * 3.0

    loss = jax.jit(msle_loss)(y_pred, y_true)
    loss = jax.block_until_ready(loss)

    # Pure-JAX reference check.
    ref = jnp.mean((jnp.log1p(y_pred) - jnp.log1p(y_true)) ** 2)
    assert jnp.allclose(loss, ref, rtol=1e-5, atol=1e-6), (loss, ref)

    print("KERNEL_OK")
</pallas_src>

<mosaic_0001>
module attributes {stable_mosaic.version = 11 : i64} {
  func.func @_msle_kernel(%arg0: i32, %arg1: i32, %arg2: memref<16x128xf32, #tpu.memory_space<vmem>>, %arg3: memref<16x128xf32, #tpu.memory_space<vmem>>, %arg4: memref<8x128xf32, #tpu.memory_space<vmem>>) attributes {dimension_semantics = [#tpu.dimension_semantics<parallel>, #tpu.dimension_semantics<arbitrary>], iteration_bounds = array<i64: 1, 1>, scalar_prefetch = 0 : i64, scratch_operands = 0 : i64, tpu.core_type = #tpu.core_type<tc>, window_params = [{transform_indices = @transform_0, window_bounds = array<i64: 16, 128>}, {transform_indices = @transform_1, window_bounds = array<i64: 16, 128>}, {transform_indices = @transform_2, window_bounds = array<i64: 8, 128>}]} {
    %c0_i32 = arith.constant 0 : i32
    %0 = arith.cmpi eq, %arg1, %c0_i32 : i32
    %1 = arith.extui %0 : i1 to i32
    %c0_i32_0 = arith.constant 0 : i32
    %2 = arith.cmpi ne, %1, %c0_i32_0 : i32
    scf.if %2 {
      %cst_8 = arith.constant 0.000000e+00 : f32
      %14 = vector.broadcast %cst_8 : f32 to vector<8x128xf32>
      %c0_9 = arith.constant 0 : index
      %c0_10 = arith.constant 0 : index
      %15 = vector.load %arg4[%c0_9, %c0_10] : memref<8x128xf32, #tpu.memory_space<vmem>>, vector<8x128xf32>
      tpu.vector_store %arg4[%c0_9, %c0_10], %14 {strides = array<i32>} : memref<8x128xf32, #tpu.memory_space<vmem>>, vector<8x128xf32>,
    } else {
    }
    %c0 = arith.constant 0 : index
    %c0_1 = arith.constant 0 : index
    %3 = vector.load %arg2[%c0, %c0_1] : memref<16x128xf32, #tpu.memory_space<vmem>>, vector<16x128xf32>
    %c0_2 = arith.constant 0 : index
    %c0_3 = arith.constant 0 : index
    %4 = vector.load %arg3[%c0_2, %c0_3] : memref<16x128xf32, #tpu.memory_space<vmem>>, vector<16x128xf32>
    %5 = math.log1p %3 : vector<16x128xf32>
    %6 = math.log1p %4 : vector<16x128xf32>
    %7 = arith.subf %5, %6 : vector<16x128xf32>
    %8 = arith.mulf %7, %7 : vector<16x128xf32>
    %c0_4 = arith.constant 0 : index
    %c0_5 = arith.constant 0 : index
    %9 = vector.load %arg4[%c0_4, %c0_5] : memref<8x128xf32, #tpu.memory_space<vmem>>, vector<8x128xf32>
    %10 = vector.shape_cast %8 : vector<16x128xf32> to vector<2x8x128xf32>
    %cst = arith.constant dense<0.000000e+00> : vector<8x128xf32>
    %11 = vector.multi_reduction <add>, %10, %cst [0] : vector<2x8x128xf32> to vector<8x128xf32>
    %12 = arith.addf %9, %11 : vector<8x128xf32>
    %c0_6 = arith.constant 0 : index
    %c0_7 = arith.constant 0 : index
    %13 = vector.load %arg4[%c0_6, %c0_7] : memref<8x128xf32, #tpu.memory_space<vmem>>, vector<8x128xf32>
    tpu.vector_store %arg4[%c0_6, %c0_7], %12 {strides = array<i32>} : memref<8x128xf32, #tpu.memory_space<vmem>>, vector<8x128xf32>,
    return
  }
  func.func @transform_0(%arg0: i32, %arg1: i32) -> (i32, i32) {
    %c1_i32 = arith.constant 1 : i32
    %0 = arith.muli %arg0, %c1_i32 : i32
    %1 = arith.addi %0, %arg1 : i32
    %c0_i32 = arith.constant 0 : i32
    %c0_i32_0 = arith.constant 0 : i32
    return %1, %c0_i32 : i32, i32
  }
  func.func @transform_1(%arg0: i32, %arg1: i32) -> (i32, i32) {
    %c1_i32 = arith.constant 1 : i32
    %0 = arith.muli %arg0, %c1_i32 : i32
    %1 = arith.addi %0, %arg1 : i32
    %c0_i32 = arith.constant 0 : i32
    %c0_i32_0 = arith.constant 0 : i32
    return %1, %c0_i32 : i32, i32
  }
  func.func @transform_2(%arg0: i32, %arg1: i32) -> (i32, i32) {
    %c0_i32 = arith.constant 0 : i32
    %c0_i32_0 = arith.constant 0 : i32
    return %arg0, %c0_i32 : i32, i32
  }
}

</mosaic_0001>

<bundles_post_ra>
// kernel: msle_loss.1
= control target key start
LH: loop header
LB: loop body
LE: loop exit
PB: predicated region body
PF: predicated region fallthrough
CT: control target
= control target key end

     0   :  { %s169_s0 = inlined_call_operand.vmem [shape: f32[16,128], index: 0, kind: input, shape index: {}]   ;;  %s170_s1 = inlined_call_operand.vmem [shape: f32[16,128], index: 1, kind: input, shape index: {}]   ;;  %s171_s2 = inlined_call_operand.vmem [shape: f32[8,128], index: 2, kind: output, shape index: {}]  }
   0x1   :  { %v60_v0 = vld [vmem:[%s169_s0] sm:$0xff]  ;;  %v61_v1 = vld [vmem:[%s169_s0 + $0x8] sm:$0xff] }
   0x2   :  { %v62_v2 = vld [vmem:[%s170_s1] sm:$0xff]  ;;  %v64_v3 = vadd.f32 1.0, %v60_v0  ;;  %v73_v4 = vadd.f32 1.0, %v61_v1  ;;  %v63_v5 = vld [vmem:[%s170_s1 + $0x8] sm:$0xff]  ;;  %v67_v7 = vmul.f32 -0.5, %v60_v0  ;;  %v76_v9 = vmul.f32 -0.5, %v61_v1 }
   0x3   :  { %v82_v6 = vadd.f32 1.0, %v62_v2  ;;  %v91_v8 = vadd.f32 1.0, %v63_v5  ;;  %v85_v10 = vmul.f32 -0.5, %v62_v2  ;;  %v94_v12 = vmul.f32 -0.5, %v63_v5 }
   0x4   :  { %125 = vlog2.f32 %v64_v3  ;;  %v68_v11 = vadd.f32 1.0, %v67_v7  ;;  %v70_v13 = vand.u32 2147483647, %v60_v0  ;;  %v77_v14 = vadd.f32 1.0, %v76_v9 }
   0x5   :  { %127 = vlog2.f32 %v73_v4  ;;  %v86_v15 = vadd.f32 1.0, %v85_v10  ;;  %v79_v16 = vand.u32 2147483647, %v61_v1  ;;  %v88_v17 = vand.u32 2147483647, %v62_v2 }
   0x6   :  { %129 = vlog2.f32 %v82_v6  ;;  %v69_v18 = vmul.f32 %v68_v11, %v60_v0  ;;  %v95_v19 = vadd.f32 1.0, %v94_v12  ;;  %vm160_vm0 = vcmp.lt.f32.partialorder %v70_v13, 0.0004427343 }
   0x7   :  { %131 = vlog2.f32 %v91_v8  ;;  %v97_v22 = vand.u32 2147483647, %v63_v5  ;;  %v78_v25 = vmul.f32 %v77_v14, %v61_v1  ;;  %v87_v26 = vmul.f32 %v86_v15, %v62_v2 }
   0x8   :  { %vm80_vm1 = vcmp.lt.f32.partialorder %v79_v16, 0.0004427343  ;;  %vm89_vm2 = vcmp.lt.f32.partialorder %v88_v17, 0.0004427343  ;;  %v96_v31 = vmul.f32 %v95_v19, %v63_v5 }
   0x9   :  { %vm98_vm3 = vcmp.lt.f32.partialorder %v97_v22, 0.0004427343 }
   0xe   :  { %v126_v20 = vpop.eup %125 }
   0xf   :  { %v128_v23 = vpop.eup %127  ;;  %v66_v24 = vmul.f32 0.6931472, %v126_v20 }
  0x10   :  { %v130_v27 = vpop.eup %129  ;;  %v75_v28 = vmul.f32 0.6931472, %v128_v23 }
  0x11   :  { %v72_v29 = vsel %vm160_vm0, %v69_v18, %v66_v24  ;;  %v84_v30 = vmul.f32 0.6931472, %v130_v27  ;;  %v132_v32 = vpop.eup %131 }
  0x12   :  { %v81_v33 = vsel %vm80_vm1, %v78_v25, %v75_v28  ;;  %v93_v35 = vmul.f32 0.6931472, %v132_v32 }
  0x13   :  { %v90_v34 = vsel %vm89_vm2, %v87_v26, %v84_v30 }
  0x14   :  { %v100_v36 = vsub.f32 %v72_v29, %v90_v34  ;;  %v99_v37 = vsel %vm98_vm3, %v96_v31, %v93_v35 }
  0x15   :  { %v101_v38 = vsub.f32 %v81_v33, %v99_v37 }
  0x16   :  { %v102_v39 = vmul.f32 %v100_v36, %v100_v36 }
  0x17   :  { %v103_v40 = vmul.f32 %v101_v38, %v101_v38 }
  0x19   :  { %v105_v41 = vadd.f32 %v103_v40, %v102_v39 }
  0x1b   :  { %107 = vst [vmem:[%s171_s2] sm:$0xff] %v105_v41 }

</bundles_post_ra>
